<compile_context>
chip_gen: v7x
topology: tpu7x:2x2x1
jax: 0.10.0
libtpu: 0.0.40
codegen_flags: <defaults>
</compile_context>

<pallas_src>
import jax
import jax.numpy as jnp
from jax.experimental import pallas as pl
from jax.experimental.pallas import tpu as pltpu


def _round_up(x, m):
    return (x + m - 1) // m * m


# ----------------------------------------------------------------------------
# Pallas kernels
# ----------------------------------------------------------------------------
def _fused_view_kernel(patches_ref, cw_ref, cb_ref, w1_ref, g_ref, bt_ref,
                       w2_ref, b2_ref, out_ref):
    """Fused backbone + SimCLR projection head for one augmented view.

    patches_ref: [B*HW, CKKp]  bf16 im2col patches (zero-padded contraction dim)
    cw_ref:      [CKKp, Fp]    bf16 flattened conv weight (zero-padded)
    cb_ref:      [1, Fp]       f32  conv bias
    w1_ref:      [Fp, Fp]      bf16 head Linear-1 (no bias)
    g_ref/bt_ref:[1, Fp]       f32  BatchNorm1d gamma / beta
    w2_ref:      [Fp, P]       bf16 head Linear-2 weight
    b2_ref:      [1, P]        f32  head Linear-2 bias
    out_ref:     [B, P]        f32  projection output for this view
    """
    B, P = out_ref.shape
    BHW = patches_ref.shape[0]
    HW = BHW // B
    Fp = cw_ref.shape[1]

    # --- backbone: one big conv-as-matmul (M=B*HW), bias+ReLU, global pool ---
    h = jnp.dot(patches_ref[...], cw_ref[...],
                preferred_element_type=jnp.float32)            # [B*HW, Fp] f32
    h = jnp.maximum(h + cb_ref[...], 0.0)                      # bias + ReLU
    feats = jnp.mean(h.reshape(B, HW, Fp), axis=1)             # [B, Fp] avg pool

    # --- projection head: Linear(no bias) -> BN(train) -> ReLU -> Linear ----
    h1 = jnp.dot(feats.astype(jnp.bfloat16), w1_ref[...],
                 preferred_element_type=jnp.float32)           # [B, Fp]
    mean = jnp.mean(h1, axis=0, keepdims=True)                 # per-view stats
    var = jnp.mean((h1 - mean) ** 2, axis=0, keepdims=True)    # biased variance
    h1 = (h1 - mean) * jax.lax.rsqrt(var + 1e-5)
    h1 = jnp.maximum(h1 * g_ref[...] + bt_ref[...], 0.0)
    out_ref[...] = (
        jnp.dot(h1.astype(jnp.bfloat16), w2_ref[...],
                preferred_element_type=jnp.float32) + b2_ref[...]
    )


def _backbone_kernel(patches_ref, cw_ref, cb_ref, out_ref):
    """Backbone only (eval path): conv-as-matmul + ReLU + global average pool.

    patches_ref: [TB, HW, CKKp] bf16
    out_ref:     [TB, Fp]       f32 (lane-dense 128-wide; sliced outside)
    """
    TB, HW, CKKp = patches_ref.shape
    Fp = cw_ref.shape[1]
    p = patches_ref[...].reshape(TB * HW, CKKp)                # batched M = TB*HW
    h = jnp.dot(p, cw_ref[...], preferred_element_type=jnp.float32)
    h = jnp.maximum(h + cb_ref[...], 0.0)
    out_ref[...] = jnp.mean(h.reshape(TB, HW, Fp), axis=1)


# ----------------------------------------------------------------------------
# pallas_call wrappers
# ----------------------------------------------------------------------------
_VMEM_LIMIT = 32 * 1024 * 1024  # safe on v5e/v6e/v7x scoped VMEM


def _fused_views_call(patches_v, batch, cw, cb, w1, g, bt, w2, b2):
    V, BHW, CKKp = patches_v.shape
    Fp = cw.shape[1]
    P = w2.shape[1]
    grid_spec = pltpu.PrefetchScalarGridSpec(
        num_scalar_prefetch=0,
        grid=(V,),
        in_specs=[
            pl.BlockSpec((None, BHW, CKKp), lambda v: (v, 0, 0)),  # per-view patches
            pl.BlockSpec((CKKp, Fp), lambda v: (0, 0)),
            pl.BlockSpec((1, Fp), lambda v: (0, 0)),
            pl.BlockSpec((Fp, Fp), lambda v: (0, 0)),
            pl.BlockSpec((1, Fp), lambda v: (0, 0)),
            pl.BlockSpec((1, Fp), lambda v: (0, 0)),
            pl.BlockSpec((Fp, P), lambda v: (0, 0)),
            pl.BlockSpec((1, P), lambda v: (0, 0)),
        ],
        out_specs=pl.BlockSpec((None, batch, P), lambda v: (v, 0, 0)),
    )
    return pl.pallas_call(
        _fused_view_kernel,
        out_shape=jax.ShapeDtypeStruct((V, batch, P), jnp.float32),
        grid_spec=grid_spec,
        compiler_params=pltpu.CompilerParams(
            dimension_semantics=("parallel",),
            vmem_limit_bytes=_VMEM_LIMIT,
        ),
    )(patches_v, cw, cb, w1, g, bt, w2, b2)


def _backbone_call(patches, cw, cb):
    B, HW, CKKp = patches.shape
    Fp = cw.shape[1]
    TB = B
    for cand in (256, 128, 64, 32, 16, 8):   # batch tile (must divide B cleanly)
        if B % cand == 0:
            TB = cand
            break
    grid_spec = pltpu.PrefetchScalarGridSpec(
        num_scalar_prefetch=0,
        grid=(B // TB,),
        in_specs=[
            pl.BlockSpec((TB, HW, CKKp), lambda i: (i, 0, 0)),
            pl.BlockSpec((CKKp, Fp), lambda i: (0, 0)),
            pl.BlockSpec((1, Fp), lambda i: (0, 0)),
        ],
        out_specs=pl.BlockSpec((TB, Fp), lambda i: (i, 0)),
    )
    return pl.pallas_call(
        _backbone_kernel,
        out_shape=jax.ShapeDtypeStruct((B, Fp), jnp.float32),
        grid_spec=grid_spec,
        compiler_params=pltpu.CompilerParams(
            dimension_semantics=("parallel",),
            vmem_limit_bytes=_VMEM_LIMIT,
        ),
    )(patches, cw, cb)


# ----------------------------------------------------------------------------
# Glue (im2col, parameter setup, module wrapper)
# ----------------------------------------------------------------------------
def _im2col_padded(x, ckk_pad, k=3):
    """NCHW f32 -> [B, H*W, CKKp] bf16 patches (same padding, stride 1)."""
    B, C, H, W = x.shape
    pad = k // 2
    xp = jnp.pad(x, ((0, 0), (0, 0), (pad, pad), (pad, pad)))
    cols = []
    for ky in range(k):
        for kx in range(k):
            cols.append(xp[:, :, ky:ky + H, kx:kx + W])
    p = jnp.stack(cols, axis=2)              # [B, C, k*k, H, W]
    p = p.transpose(0, 3, 4, 1, 2)           # [B, H, W, C, k*k]
    p = p.reshape(B, H * W, C * k * k)       # C-major then (ky, kx) -> matches weight
    p = jnp.pad(p, ((0, 0), (0, 0), (0, ckk_pad - C * k * k)))
    return p.astype(jnp.bfloat16)


class SimCLRPallas:
    """JAX/Pallas re-implementation of the SimCLR forward pass."""

    def __init__(self, in_channels=3, num_ftrs=64, projection_dim=128,
                 temperature=0.5, key=jax.random.PRNGKey(0)):
        self.num_ftrs = num_ftrs
        self.projection_dim = projection_dim
        self.temperature = temperature
        self.ckk = in_channels * 9
        self.ckk_pad = _round_up(self.ckk, 128)   # lane-pad contraction dim
        self.f_pad = _round_up(num_ftrs, 128)     # lane-pad feature dim

        k1, k2, k3, k4, k5 = jax.random.split(key, 5)

        # backbone conv(3x3, C->num_ftrs) weight/bias, zero-padded to MXU lanes
        conv_w = jax.random.normal(k1, (num_ftrs, in_channels, 3, 3),
                                   jnp.float32) / jnp.sqrt(float(self.ckk))
        cw = conv_w.reshape(num_ftrs, self.ckk).T                    # [CKK, F]
        cw = jnp.pad(cw, ((0, self.ckk_pad - self.ckk),
                          (0, self.f_pad - num_ftrs)))
        self.conv_w = cw.astype(jnp.bfloat16)                        # [CKKp, Fp]
        cb = 0.01 * jax.random.normal(k2, (1, num_ftrs), jnp.float32)
        self.conv_b = jnp.pad(cb, ((0, 0), (0, self.f_pad - num_ftrs)))

        # projection head: Linear(D,D,bias=False) -> BN(D) -> ReLU -> Linear(D,P)
        w1 = jax.random.normal(k3, (num_ftrs, num_ftrs),
                               jnp.float32) / jnp.sqrt(float(num_ftrs))
        self.w1 = jnp.pad(w1, ((0, self.f_pad - num_ftrs),
                               (0, self.f_pad - num_ftrs))).astype(jnp.bfloat16)
        g = jnp.ones((1, num_ftrs), jnp.float32)
        self.bn_gamma = jnp.pad(g, ((0, 0), (0, self.f_pad - num_ftrs)))
        self.bn_beta = jnp.zeros((1, self.f_pad), jnp.float32)
        w2 = jax.random.normal(k4, (num_ftrs, projection_dim),
                               jnp.float32) / jnp.sqrt(float(num_ftrs))
        self.w2 = jnp.pad(w2, ((0, self.f_pad - num_ftrs),
                               (0, 0))).astype(jnp.bfloat16)         # [Fp, P]
        self.b2 = 0.01 * jax.random.normal(k5, (1, projection_dim), jnp.float32)

    # --- backbone (feature extractor, == model.backbone(x)) -----------------
    def backbone(self, x):
        patches = _im2col_padded(x.astype(jnp.float32), self.ckk_pad)
        feats_p = _backbone_call(patches, self.conv_w, self.conv_b)  # [B, Fp]
        return feats_p[:, :self.num_ftrs]                            # [B, F]

    # --- SimCLR.forward -------------------------------------------------------
    def forward(self, x, training=True):
        if training:
            x0, x1 = x  # tuple of two augmented views
            B = x0.shape[0]
            p0 = _im2col_padded(x0.astype(jnp.float32), self.ckk_pad)
            p1 = _im2col_padded(x1.astype(jnp.float32), self.ckk_pad)
            bhw = p0.shape[0] * p0.shape[1]
            patches_v = jnp.stack(
                [p0.reshape(bhw, self.ckk_pad),
                 p1.reshape(bhw, self.ckk_pad)], axis=0)             # [2, B*HW, CKKp]
            z = _fused_views_call(patches_v, B, self.conv_w, self.conv_b,
                                  self.w1, self.bn_gamma, self.bn_beta,
                                  self.w2, self.b2)                  # [2, B, P]
            return z[0], z[1]
        return self.backbone(x)

    def get_features(self, x):
        return self.backbone(x)


# ----------------------------------------------------------------------------
if __name__ == "__main__":
    key = jax.random.PRNGKey(0)
    kx0, kx1 = jax.random.split(key)
    B, C, H, W = 2, 3, 16, 16
    x0 = jax.random.normal(kx0, (B, C, H, W), jnp.float32)
    x1 = jax.random.normal(kx1, (B, C, H, W), jnp.float32)

    model = SimCLRPallas(in_channels=C, num_ftrs=64, projection_dim=128)

    # training-mode forward: tuple of views -> tuple of projections
    z0, z1 = model.forward((x0, x1), training=True)
    # eval-mode forward: backbone features
    feats = model.forward(x0, training=False)

    jax.block_until_ready((z0, z1, feats))
    assert z0.shape == (B, 128) and z1.shape == (B, 128)
    assert feats.shape == (B, 64)
    assert bool(jnp.all(jnp.isfinite(z0))) and bool(jnp.all(jnp.isfinite(z1)))
    print("KERNEL_OK")
</pallas_src>

<mosaic_0001>
module attributes {stable_mosaic.version = 11 : i64} {
  func.func @_fused_view_kernel(%arg0: i32, %arg1: memref<1x512x128xbf16, #tpu.memory_space<vmem>>, %arg2: memref<128x128xbf16, #tpu.memory_space<vmem>>, %arg3: memref<1x128xf32, #tpu.memory_space<vmem>>, %arg4: memref<128x128xbf16, #tpu.memory_space<vmem>>, %arg5: memref<1x128xf32, #tpu.memory_space<vmem>>, %arg6: memref<1x128xf32, #tpu.memory_space<vmem>>, %arg7: memref<128x128xbf16, #tpu.memory_space<vmem>>, %arg8: memref<1x128xf32, #tpu.memory_space<vmem>>, %arg9: memref<1x2x128xf32, #tpu.memory_space<vmem>>) attributes {dimension_semantics = [#tpu.dimension_semantics<parallel>], iteration_bounds = array<i64: 2>, scalar_prefetch = 0 : i64, scratch_operands = 0 : i64, tpu.core_type = #tpu.core_type<tc>, window_params = [{transform_indices = @transform_0, window_bounds = array<i64: 1, 512, 128>}, {pipeline_mode = #tpu.pipeline_mode<synchronous>, transform_indices = @transform_1, window_bounds = array<i64: 128, 128>}, {pipeline_mode = #tpu.pipeline_mode<synchronous>, transform_indices = @transform_2, window_bounds = array<i64: 1, 128>}, {pipeline_mode = #tpu.pipeline_mode<synchronous>, transform_indices = @transform_3, window_bounds = array<i64: 128, 128>}, {pipeline_mode = #tpu.pipeline_mode<synchronous>, transform_indices = @transform_4, window_bounds = array<i64: 1, 128>}, {pipeline_mode = #tpu.pipeline_mode<synchronous>, transform_indices = @transform_5, window_bounds = array<i64: 1, 128>}, {pipeline_mode = #tpu.pipeline_mode<synchronous>, transform_indices = @transform_6, window_bounds = array<i64: 128, 128>}, {pipeline_mode = #tpu.pipeline_mode<synchronous>, transform_indices = @transform_7, window_bounds = array<i64: 1, 128>}, {transform_indices = @transform_8, window_bounds = array<i64: 1, 2, 128>}]} {
    %c0 = arith.constant 0 : index
    %c0_0 = arith.constant 0 : index
    %c0_1 = arith.constant 0 : index
    %0 = vector.load %arg1[%c0, %c0_0, %c0_1] : memref<1x512x128xbf16, #tpu.memory_space<vmem>>, vector<1x512x128xbf16>
    %1 = vector.shape_cast %0 : vector<1x512x128xbf16> to vector<512x128xbf16>
    %c0_2 = arith.constant 0 : index
    %c0_3 = arith.constant 0 : index
    %2 = vector.load %arg2[%c0_2, %c0_3] : memref<128x128xbf16, #tpu.memory_space<vmem>>, vector<128x128xbf16>
    %cst = arith.constant dense<0.000000e+00> : vector<512x128xf32>
    %3 = tpu.matmul %1, %2, %cst {dimension_numbers = #tpu.dot_dimension_numbers<[1], [0], [0], [1], [0, 0, 1, 1], [], []>} : vector<512x128xbf16>, vector<128x128xbf16>, vector<512x128xf32> -> vector<512x128xf32>
    %c0_4 = arith.constant 0 : index
    %c0_5 = arith.constant 0 : index
    %4 = vector.load %arg3[%c0_4, %c0_5] : memref<1x128xf32, #tpu.memory_space<vmem>>, vector<1x128xf32>
    %5 = vector.broadcast %4 : vector<1x128xf32> to vector<512x128xf32>
    %6 = arith.addf %3, %5 : vector<512x128xf32>
    %cst_6 = arith.constant 0.000000e+00 : f32
    %7 = vector.broadcast %cst_6 : f32 to vector<512x128xf32>
    %8 = arith.maximumf %6, %7 : vector<512x128xf32>
    %9 = vector.shape_cast %8 : vector<512x128xf32> to vector<2x256x128xf32>
    %cst_7 = arith.constant dense<0.000000e+00> : vector<2x128xf32>
    %10 = vector.multi_reduction <add>, %9, %cst_7 [1] : vector<2x256x128xf32> to vector<2x128xf32>
    %cst_8 = arith.constant 2.560000e+02 : f32
    %11 = vector.broadcast %cst_8 : f32 to vector<2x128xf32>
    %12 = arith.divf %10, %11 : vector<2x128xf32>
    %13 = arith.truncf %12 : vector<2x128xf32> to vector<2x128xbf16>
    %c0_9 = arith.constant 0 : index
    %c0_10 = arith.constant 0 : index
    %14 = vector.load %arg4[%c0_9, %c0_10] : memref<128x128xbf16, #tpu.memory_space<vmem>>, vector<128x128xbf16>
    %cst_11 = arith.constant dense<0.000000e+00> : vector<2x128xf32>
    %15 = tpu.matmul %13, %14, %cst_11 {dimension_numbers = #tpu.dot_dimension_numbers<[1], [0], [0], [1], [0, 0, 1, 1], [], []>} : vector<2x128xbf16>, vector<128x128xbf16>, vector<2x128xf32> -> vector<2x128xf32>
    %cst_12 = arith.constant dense<0.000000e+00> : vector<128xf32>
    %16 = vector.multi_reduction <add>, %15, %cst_12 [0] : vector<2x128xf32> to vector<128xf32>
    %17 = vector.shape_cast %16 : vector<128xf32> to vector<1x128xf32>
    %cst_13 = arith.constant 2.000000e+00 : f32
    %18 = vector.broadcast %cst_13 : f32 to vector<1x128xf32>
    %19 = arith.divf %17, %18 : vector<1x128xf32>
    %20 = vector.broadcast %19 : vector<1x128xf32> to vector<2x128xf32>
    %21 = arith.subf %15, %20 : vector<2x128xf32>
    %22 = arith.mulf %21, %21 : vector<2x128xf32>
    %cst_14 = arith.constant dense<0.000000e+00> : vector<128xf32>
    %23 = vector.multi_reduction <add>, %22, %cst_14 [0] : vector<2x128xf32> to vector<128xf32>
    %24 = vector.shape_cast %23 : vector<128xf32> to vector<1x128xf32>
    %cst_15 = arith.constant 2.000000e+00 : f32
    %25 = vector.broadcast %cst_15 : f32 to vector<1x128xf32>
    %26 = arith.divf %24, %25 : vector<1x128xf32>
    %27 = vector.broadcast %19 : vector<1x128xf32> to vector<2x128xf32>
    %28 = arith.subf %15, %27 : vector<2x128xf32>
    %cst_16 = arith.constant 9.99999974E-6 : f32
    %29 = vector.broadcast %cst_16 : f32 to vector<1x128xf32>
    %30 = arith.addf %26, %29 : vector<1x128xf32>
    %31 = math.rsqrt %30 : vector<1x128xf32>
    %32 = vector.broadcast %31 : vector<1x128xf32> to vector<2x128xf32>
    %33 = arith.mulf %28, %32 : vector<2x128xf32>
    %c0_17 = arith.constant 0 : index
    %c0_18 = arith.constant 0 : index
    %34 = vector.load %arg5[%c0_17, %c0_18] : memref<1x128xf32, #tpu.memory_space<vmem>>, vector<1x128xf32>
    %35 = vector.broadcast %34 : vector<1x128xf32> to vector<2x128xf32>
    %36 = arith.mulf %33, %35 : vector<2x128xf32>
    %c0_19 = arith.constant 0 : index
    %c0_20 = arith.constant 0 : index
    %37 = vector.load %arg6[%c0_19, %c0_20] : memref<1x128xf32, #tpu.memory_space<vmem>>, vector<1x128xf32>
    %38 = vector.broadcast %37 : vector<1x128xf32> to vector<2x128xf32>
    %39 = arith.addf %36, %38 : vector<2x128xf32>
    %cst_21 = arith.constant 0.000000e+00 : f32
    %40 = vector.broadcast %cst_21 : f32 to vector<2x128xf32>
    %41 = arith.maximumf %39, %40 : vector<2x128xf32>
    %42 = arith.truncf %41 : vector<2x128xf32> to vector<2x128xbf16>
    %c0_22 = arith.constant 0 : index
    %c0_23 = arith.constant 0 : index
    %43 = vector.load %arg7[%c0_22, %c0_23] : memref<128x128xbf16, #tpu.memory_space<vmem>>, vector<128x128xbf16>
    %cst_24 = arith.constant dense<0.000000e+00> : vector<2x128xf32>
    %44 = tpu.matmul %42, %43, %cst_24 {dimension_numbers = #tpu.dot_dimension_numbers<[1], [0], [0], [1], [0, 0, 1, 1], [], []>} : vector<2x128xbf16>, vector<128x128xbf16>, vector<2x128xf32> -> vector<2x128xf32>
    %c0_25 = arith.constant 0 : index
    %c0_26 = arith.constant 0 : index
    %45 = vector.load %arg8[%c0_25, %c0_26] : memref<1x128xf32, #tpu.memory_space<vmem>>, vector<1x128xf32>
    %46 = vector.broadcast %45 : vector<1x128xf32> to vector<2x128xf32>
    %47 = arith.addf %44, %46 : vector<2x128xf32>
    %c0_27 = arith.constant 0 : index
    %c0_28 = arith.constant 0 : index
    %c0_29 = arith.constant 0 : index
    %48 = vector.load %arg9[%c0_27, %c0_28, %c0_29] : memref<1x2x128xf32, #tpu.memory_space<vmem>>, vector<1x2x128xf32>
    %49 = vector.shape_cast %48 : vector<1x2x128xf32> to vector<2x128xf32>
    %50 = vector.shape_cast %47 : vector<2x128xf32> to vector<1x2x128xf32>
    tpu.vector_store %arg9[%c0_27, %c0_28, %c0_29], %50 {strides = array<i32>} : memref<1x2x128xf32, #tpu.memory_space<vmem>>, vector<1x2x128xf32>,
    return
  }
  func.func @transform_0(%arg0: i32) -> (i32, i32, i32) {
    %c0_i32 = arith.constant 0 : i32
    %c0_i32_0 = arith.constant 0 : i32
    %c0_i32_1 = arith.constant 0 : i32
    return %arg0, %c0_i32, %c0_i32_0 : i32, i32, i32
  }
  func.func @transform_1(%arg0: i32) -> (i32, i32) {
    %c0_i32 = arith.constant 0 : i32
    %c0_i32_0 = arith.constant 0 : i32
    %c0_i32_1 = arith.constant 0 : i32
    return %c0_i32, %c0_i32_0 : i32, i32
  }
  func.func @transform_2(%arg0: i32) -> (i32, i32) {
    %c0_i32 = arith.constant 0 : i32
    %c0_i32_0 = arith.constant 0 : i32
    %c0_i32_1 = arith.constant 0 : i32
    return %c0_i32, %c0_i32_0 : i32, i32
  }
  func.func @transform_3(%arg0: i32) -> (i32, i32) {
    %c0_i32 = arith.constant 0 : i32
    %c0_i32_0 = arith.constant 0 : i32
    %c0_i32_1 = arith.constant 0 : i32
    return %c0_i32, %c0_i32_0 : i32, i32
  }
  func.func @transform_4(%arg0: i32) -> (i32, i32) {
    %c0_i32 = arith.constant 0 : i32
    %c0_i32_0 = arith.constant 0 : i32
    %c0_i32_1 = arith.constant 0 : i32
    return %c0_i32, %c0_i32_0 : i32, i32
  }
  func.func @transform_5(%arg0: i32) -> (i32, i32) {
    %c0_i32 = arith.constant 0 : i32
    %c0_i32_0 = arith.constant 0 : i32
    %c0_i32_1 = arith.constant 0 : i32
    return %c0_i32, %c0_i32_0 : i32, i32
  }
  func.func @transform_6(%arg0: i32) -> (i32, i32) {
    %c0_i32 = arith.constant 0 : i32
    %c0_i32_0 = arith.constant 0 : i32
    %c0_i32_1 = arith.constant 0 : i32
    return %c0_i32, %c0_i32_0 : i32, i32
  }
  func.func @transform_7(%arg0: i32) -> (i32, i32) {
    %c0_i32 = arith.constant 0 : i32
    %c0_i32_0 = arith.constant 0 : i32
    %c0_i32_1 = arith.constant 0 : i32
    return %c0_i32, %c0_i32_0 : i32, i32
  }
  func.func @transform_8(%arg0: i32) -> (i32, i32, i32) {
    %c0_i32 = arith.constant 0 : i32
    %c0_i32_0 = arith.constant 0 : i32
    %c0_i32_1 = arith.constant 0 : i32
    return %arg0, %c0_i32, %c0_i32_0 : i32, i32, i32
  }
}

</mosaic_0001>

<bundles_post_ra>
// kernel: tpu_custom_call.1
= control target key start
LH: loop header
LB: loop body
LE: loop exit
PB: predicated region body
PF: predicated region fallthrough
CT: control target
= control target key end

     0   :  { %13 = vsyncpa [#allocation3], 0  ;;  %s2629_s0 = inlined_call_operand.hbm [shape: bf16[2,512,128], index: 0, kind: input, shape index: {}]   ;;  %s2630_s1 = inlined_call_operand.hbm [shape: bf16[128,128], index: 1, kind: input, shape index: {}]   ;;  %s2631_s2 = inlined_call_operand.vmem [shape: f32[1,128], index: 2, kind: input, shape index: {}]   ;;  %s2632_s3 = inlined_call_operand.hbm [shape: bf16[128,128], index: 3, kind: input, shape index: {}]   ;;  %s2633_s4 = inlined_call_operand.vmem [shape: f32[1,128], index: 4, kind: input, shape index: {}]   ;;  %s2634_s5 = inlined_call_operand.vmem [shape: f32[1,128], index: 5, kind: input, shape index: {}]   ;;  %s2635_s6 = inlined_call_operand.hbm [shape: bf16[128,128], index: 6, kind: input, shape index: {}]   ;;  %s2636_s7 = inlined_call_operand.vmem [shape: f32[1,128], index: 7, kind: input, shape index: {}]   ;;  %s2637_s8 = inlined_call_operand.hbm [shape: f32[2,2,128], index: 8, kind: output, shape index: {}]  }
   0x1   :  { %15 = vsyncpa [#allocation3 + $0x1], 0 }
   0x2   :  { %16 = vsyncpa [#allocation6], 0 }
   0x3   :  { %17 = vsyncpa [#allocation9], 0 }
   0x4   :  { %18 = vsyncpa [#allocation4], 0 }
   0x5   :  { %20 = vsyncpa [#allocation4 + $0x1], 0  ;;  %s2163_s27 = smov 0   ;;  %s2165_s28 = smov 0  }
   0x6   :  { %s2167_s29 = smov 0   ;;  %s2169_s30 = smov 0  }
   0x7 LB: > { %2643 = sst [smem:[#allocation15_spill]] %s2095_s27  ;;  %s2184_s9 = sadd.s32 4294967295, %s2107_s30   ;;  %s2107_s30 = sphi %s2169_s30, %s2666_s30   ;;  %s2103_s29 = sphi %s2167_s29, %s2665_s29   ;;  %s2099_s28 = sphi %s2165_s28, %s2664_s28   ;;  %s2095_s27 = sphi %s2163_s27, %s2663_s27  }
   0x8   : > { %s1506_s10 = sadd.s32 4294967294, %s2107_s30   ;;  %p46_p0 = scmp.ne.s32.totalorder %s2099_s28, %s2095_s27 }
   0x9   : > { %p2638_p1 = scmp.eq.s32.totalorder %s2184_s9, 0  ;;  %p223_p3 = scmp.eq.s32.totalorder %s1506_s10, 1 }
   0xa   : > { %p1507_p5 = scmp.ge.s32.totalorder %s2107_s30, 1  ;;  %p230_p7 = scmp.lt.s32.totalorder %s2107_s30, 3 }
   0xb   : > { %p2193_p4 = por %p2638_p1, %p46_p0  ;;  %p2198_p6 = por %p223_p3, %p46_p0 }
   0xc   : > { %p2203_p8 = pnand %p1507_p5, %p230_p7  ;;  %s2109_s14 = smov [#allocation5]  }
   0xd   : > { %s2644_s11 = scalar_select %p2193_p4, 1, 0 }
   0xe   : > { %s2645_s12 = scalar_select %p2198_p6, 1, 0 }
   0xf   : > { %s2647_s13 = scalar_select %p2203_p8, 1, 0 }
  0x10   : > { %2646 = sst [smem:[#allocation16_spill]] %s2645_s12  ;;  %s242_s15 = sshll.u32 %s2109_s14, 4  ;;  %s2207_s15 = int_to_ptr.vmem [resolvable:$true] %s242_s15 }
  0x11   : > { %p1796_p9 = pneg %p2203_p8  ;;  %s2110_s17 = smov [#allocation7]  }
  0x12   : > { %s258_s18 = sshll.u32 %s2110_s17, 4  ;;  %s2111_s19 = smov [#allocation8]   ;;  %s2218_s18 = int_to_ptr.vmem [resolvable:$true] %s258_s18 }
  0x13   : > { %p2214_p11 = pnand %p1796_p9, %p2638_p1  ;;  %s2220_s20 = sshll.u32 %s2111_s19, 4  ;;  %s278_s20 = int_to_ptr.vmem [resolvable:$true] %s2220_s20 }
  0x14   : > { %s1919_s23 = scalar_lea.hbm %s2630_s1, 1024 }
  0x15   : > { %p1920_p12 = scmp.ne.s32.totalorder %s2630_s1, %s1919_s23  ;;  %p2230_p13 = pneg %p2214_p11 }
  0x16   : > { %p1926_p5 = scmp.lt.u32.totalorder %s1919_s23, %s2630_s1 }
  0x17   : > { %p1922_p0 = pnand %p2230_p13, %p1920_p12 }
  0x19   : > { %p1923_p3 = pneg %p1922_p0 }
  0x1b   : > { %p1928_p7 = pnand %p1926_p5, %p1923_p3 }
  0x1d   : > { %1931 = shalt.err (!%p1928_p7)
}
  0x1e   : > { %s1932_s17 = scalar_lea.vmem %s2207_s15, 1024  ;;  %p1940_p2 = scmp.lt.s32.totalorder %s2207_s15, %s2207_s15 }
  0x1f   : > { %p1933_p9 = scmp.ne.s32.totalorder %s2207_s15, %s1932_s17  ;;  %p1941_p6 = scmp.lt.s32.totalorder %s1932_s17, %s1932_s17 }
  0x21   : > { %p1935_p10 = pnand %p1933_p9, %p2230_p13  ;;  %p1942_p12 = por %p1941_p6, %p1940_p2 }
  0x23   : > { %p1936_p1 = pneg %p1935_p10 }
  0x25   : > { %p1943_p0 = pnand %p1942_p12, %p1936_p1 }
  0x27   : > { %1946 = shalt.err (!%p1943_p0)
}
  0x28   : > { %s2112_s19 = smov 64   ;;  %s2113_s21 = smov 4  }
  0x29   : > { %1799 = dma.hbm_to_vmem [thread:$0]  (!%p2214_p11), %s2630_s1, 1024, %s2207_s15, [#allocation6], %s2112_s19, %s2112_s19, %s2113_s21  }
  0x2a   : > { %s1947_s10 = scalar_lea.hbm %s2632_s3, 1024 }
  0x2b   : > { %p1948_p1 = scmp.ne.s32.totalorder %s2632_s3, %s1947_s10  ;;  %p1954_p10 = scmp.lt.u32.totalorder %s1947_s10, %s2632_s3 }
  0x2d   : > { %p1950_p2 = pnand %p1948_p1, %p2230_p13 }
  0x2f   : > { %p1951_p6 = pneg %p1950_p2 }
  0x31   : > { %p1956_p3 = pnand %p1954_p10, %p1951_p6 }
  0x33   : > { %1959 = shalt.err (!%p1956_p3)
}
  0x34   : > { %s1960_s15 = scalar_lea.vmem %s2218_s18, 1024  ;;  %p1968_p12 = scmp.lt.s32.totalorder %s2218_s18, %s2218_s18 }
  0x35   : > { %p1961_p5 = scmp.ne.s32.totalorder %s2218_s18, %s1960_s15  ;;  %p1969_p0 = scmp.lt.s32.totalorder %s1960_s15, %s1960_s15 }
  0x37   : > { %p1963_p7 = pnand %p1961_p5, %p2230_p13  ;;  %p1970_p1 = por %p1969_p0, %p1968_p12 }
  0x39   : > { %p1964_p9 = pneg %p1963_p7 }
  0x3b   : > { %p1971_p2 = pnand %p1970_p1, %p1964_p9 }
  0x3d   : > { %1974 = shalt.err (!%p1971_p2)
}
  0x3e   : > { %1802 = dma.hbm_to_vmem [thread:$0]  (!%p2214_p11), %s2632_s3, 1024, %s2218_s18, [#allocation6], %s2112_s19, %s2112_s19, %s2113_s21  }
  0x3f   : > { %s1975_s24 = scalar_lea.hbm %s2635_s6, 1024 }
  0x40   : > { %p1976_p6 = scmp.ne.s32.totalorder %s2635_s6, %s1975_s24  ;;  %p1982_p5 = scmp.lt.u32.totalorder %s1975_s24, %s2635_s6 }
  0x42   : > { %p1978_p10 = pnand %p1976_p6, %p2230_p13 }
  0x44   : > { %p1979_p3 = pneg %p1978_p10 }
  0x46   : > { %p1984_p7 = pnand %p1982_p5, %p1979_p3 }
  0x48   : > { %1987 = shalt.err (!%p1984_p7)
}
  0x49   : > { %s1988_s15 = scalar_lea.vmem %s278_s20, 1024  ;;  %p1996_p1 = scmp.lt.s32.totalorder %s278_s20, %s278_s20 }
  0x4a   : > { %p1989_p9 = scmp.ne.s32.totalorder %s278_s20, %s1988_s15  ;;  %p1997_p2 = scmp.lt.s32.totalorder %s1988_s15, %s1988_s15 }
  0x4c   : > { %p1991_p12 = pnand %p1989_p9, %p2230_p13  ;;  %p1998_p4 = por %p1997_p2, %p1996_p1 }
  0x4e   : > { %p1992_p0 = pneg %p1991_p12 }
  0x50   : > { %p1999_p8 = pnand %p1998_p4, %p1992_p0 }
  0x52   : > { %2002 = shalt.err (!%p1999_p8)
}
  0x53   : > { %1805 = dma.hbm_to_vmem [thread:$0]  (!%p2214_p11), %s2635_s6, 1024, %s278_s20, [#allocation9], %s2112_s19, %s2112_s19, %s2113_s21  }
  0x54   : > { %s2303_s26 = sadd.s32 1, %s2107_s30   ;;  %s33_s12 = sadd.s32 1, %s2103_s29 }
  0x55   : > { %s30_s16 = ssub.s32 %s2107_s30, %s2303_s26  ;;  %p40_p8 = scmp.ne.s32.totalorder %s2103_s29, %s2099_s28 }
  0x56   : > { %p31_p4 = scmp.eq.s32.totalorder %s30_s16, 0  ;;  %p41_p13 = scmp.eq.s32.totalorder %s2107_s30, 0 }
  0x57   : > { %p1817_p6 = scmp.lt.s32.totalorder %s2107_s30, 2  ;;  %p2650_p3 = scmp.eq.s32.totalorder %s2184_s9, 1 }
  0x58   : > { %s2313_s22 = scalar_select %p31_p4, %s2103_s29, %s33_s12  }
  0x59   : > { %p42_p10 = por %p41_p13, %p40_p8  ;;  %p2317_p5 = por %p2650_p3, %p40_p8 }
  0x5a   : > { %s294_s24 = sand.u32 1, %s2103_s29   ;;  %s1585_s25 = sshll.u32 %s2107_s30, 12 }
  0x5b   : > { %s1512_s20 = sshll.u32 %s294_s24, 8  ;;  %s2326_s17 = scalar_lea.hbm %s2629_s0, %s1585_s25 }
  0x5c   : > { %s298_s15 = scalar_lea.vmem [#allocation2], %s1512_s20  ;;  %p2328_p11 = pnand %p1817_p6, %p42_p10 }
  0x5d   : > { %s305_s18 = sshll.u32 %s298_s15, 4  ;;  %s2334_s16 = scalar_lea.sflag [#allocation3], %s294_s24  ;;  %s2332_s18 = int_to_ptr.vmem [resolvable:$true] %s305_s18 }
  0x5e   : > { %s2003_s12 = scalar_lea.hbm %s2326_s17, 4096  ;;  %p2005_p9 = pneg %p2328_p11 }
  0x5f   : > { %p2004_p7 = scmp.ne.s32.totalorder %s2326_s17, %s2003_s12  ;;  %s2008_s10 = scalar_lea.hbm %s2629_s0, 8192 }
  0x60   : > { %p2009_p1 = scmp.lt.u32.totalorder %s2326_s17, %s2629_s0  ;;  %p2010_p2 = scmp.lt.u32.totalorder %s2008_s10, %s2003_s12 }
  0x61   : > { %p2006_p12 = pnand %p2005_p9, %p2004_p7  ;;  %p2012_p8 = scmp.lt.u32.totalorder %s2003_s12, %s2326_s17 }
  0x62   : > { %p2011_p4 = por %p2010_p2, %p2009_p1 }
  0x63   : > { %p2007_p0 = pneg %p2006_p12 }
  0x64   : > { %p2013_p13 = por %p2012_p8, %p2011_p4 }
  0x66   : > { %p2014_p6 = pnand %p2013_p13, %p2007_p0 }
  0x68   : > { %2017 = shalt.err (!%p2014_p6)
}
  0x69   : > { %s2018_s24 = scalar_lea.vmem %s2332_s18, 4096  ;;  %s2114_s25 = smov [#allocation2]  }
  0x6a   : > { %p2019_p10 = scmp.ne.s32.totalorder %s2332_s18, %s2018_s24  ;;  %s2023_s20 = sshll.u32 %s2114_s25, 4  ;;  %s2024_s20 = int_to_ptr.vmem [resolvable:$false] %s2023_s20 }
  0x6b   : > { %s2025_s14 = scalar_lea.vmem %s2024_s20, 8192  ;;  %p2026_p12 = scmp.lt.s32.totalorder %s2332_s18, %s2024_s20 }
  0x6c   : > { %p2021_p3 = pnand %p2019_p10, %p2005_p9  ;;  %p2027_p1 = scmp.lt.s32.totalorder %s2025_s14, %s2018_s24 }
  0x6e   : > { %p2022_p7 = pneg %p2021_p3  ;;  %p2028_p2 = por %p2027_p1, %p2026_p12 }
  0x70   : > { %p2029_p4 = pnand %p2028_p2, %p2022_p7 }
  0x72   : > { %2032 = shalt.err (!%p2029_p4)
}
  0x73   : > { %1809 = dma.hbm_to_vmem [thread:$0]  (!%p2328_p11), %s2326_s17, 4096, %s2332_s18, %s2334_s16, %s2112_s19, %s2112_s19, %s2113_s21  }
  0x74   : > { %p2653_p9 = scmp.ne.s32.totalorder %s2647_s13, 0 }
  0x75   : > { %s2368_s12 = sand.u32 (!%p2653_p9), 1, %s2099_s28   ;;  %p2654_p0 = scmp.ne.s32.totalorder (!%p2653_p9), %s2644_s11, 0 }
  0x76   : > { %317 = sbr.rel (%p2653_p9) target bundleno = 1029 (0x405), region = 52  ;;  %s1516_s10 = sshll.u32 (!%p2653_p9), %s2368_s12, 8 }
  0x77   : > { %s320_s15 = scalar_lea.sflag (!%p2653_p9), [#allocation3], %s2368_s12  ;;  %s2372_s24 = scalar_lea.vmem (!%p2653_p9), [#allocation2], %s1516_s10 }
  0x7d   : > { %2078 = dma.done.wait (%p2654_p0), %s320_s15, 4096  }
  0x7e   : > { %2080 = vsyncadd (%p2654_p0), %s320_s15, 4294963200  ;;  %p2655_p11 = scmp.eq.s32.totalorder %s2184_s9, 0 }
  0x80   : > { %2082 = dma.done.wait (%p2655_p11), [#allocation6], 2048   ;;  %p2656_p8 = pmov %p2655_p11 }
  0x82   : > { %2084 = vsyncadd (%p2656_p8), [#allocation6], 4294965248  ;;  %p2657_p13 = pmov %p2656_p8 }
  0x83   : > { %p2658_p6 = pmov %p2656_p8 }
  0x84   : > { %2086 = dma.done.wait (%p2657_p13), [#allocation9], 1024  }
  0x85   : > { %2088 = vsyncadd (%p2658_p6), [#allocation9], 4294966272  ;;  %v1861_v0 = vld [vmem:[#allocation5] sm:$0xff]   ;;  %v1862_v1 = vld [vmem:[#allocation5 + $0x8] sm:$0xff]   ;;  %v2115_v41 = vmov 0.0   ;;  %vm2116_vm0 = vmmov 0  }
  0x86   : > { %1644 = vmatprep.subr.bf16.mxu0 %v1861_v0  ;;  %1764 = vmatprep.subr.bf16.mxu1 %v1861_v0  ;;  %v1863_v2 = vld [vmem:[#allocation5 + $0x10] sm:$0xff]   ;;  %v1864_v3 = vld [vmem:[#allocation5 + $0x18] sm:$0xff]   ;;  %v1869_v4 = vld [vmem:[%s2372_s24] sm:$0xff]   ;;  %vm1148_vm1 = vcmask 1041409   ;;  %vm1240_vm2 = vcmask 1041408   ;;  %s1520_s27 = sshll.u32 %s2368_s12, 1 }
  0x87   : > { %1645 = vmatpush3.bf16.msra.mxu0 %v1861_v0  ;;  %1772 = vmatpush3.bf16.msra.mxu1 %v1861_v0  ;;  %v1865_v5 = vld [vmem:[#allocation5 + $0x20] sm:$0xff]   ;;  %v1866_v6 = vld [vmem:[#allocation5 + $0x28] sm:$0xff]   ;;  %v1867_v7 = vld [vmem:[#allocation5 + $0x30] sm:$0xff]   ;;  %s1582_s20 = sshll.u32 %s2184_s9, 5  ;;  %s367_s14 = scalar_lea.vmem [#allocation10], %s1520_s27 }
  0x88   : > { %1646 = vmatprep.subr.bf16.mxu0 %v1862_v1  ;;  %1765 = vmatprep.subr.bf16.mxu1 %v1862_v1  ;;  %v1868_v8 = vld [vmem:[#allocation5 + $0x38] sm:$0xff]   ;;  %v1870_v9 = vld [vmem:[%s2372_s24 + $0x8] sm:$0xff]   ;;  %v1871_v10 = vld [vmem:[%s2372_s24 + $0x10] sm:$0xff]   ;;  %s1407_s10 = sshll.u32 %s367_s14, 4  ;;  %s2585_s11 = scalar_lea.hbm %s2637_s8, %s1582_s20  ;;  %s2587_s10 = int_to_ptr.vmem [resolvable:$true] %s1407_s10 }
  0x89   : > { %1660 = vmatprep.mubr.bf16.mxu0 %v1869_v4  ;;  %v1891_v11 = vld [vmem:[%s2372_s24 + $0xb0] sm:$0xff]   ;;  %v1892_v12 = vld [vmem:[%s2372_s24 + $0xb8] sm:$0xff]   ;;  %v1893_v13 = vld [vmem:[%s2372_s24 + $0xc0] sm:$0xff]   ;;  %s1394_s13 = scalar_lea.sflag [#allocation4], %s2368_s12  ;;  %s2033_s9 = scalar_lea.vmem %s2587_s10, 32 }
  0x8a   : > { %1704 = vmatprep.mubr.bf16.mxu1 %v1891_v11  ;;  %v1872_v14 = vld [vmem:[%s2372_s24 + $0x18] sm:$0xff]   ;;  %v1873_v15 = vld [vmem:[%s2372_s24 + $0x20] sm:$0xff]   ;;  %v1894_v16 = vld [vmem:[%s2372_s24 + $0xc8] sm:$0xff]   ;;  %p2034_p10 = scmp.ne.s32.totalorder %s2587_s10, %s2033_s9  ;;  %s2117_s19 = smov [#allocation10]  }
  0x8b   : > { %1647 = vmatpush3.bf16.msra.mxu0 %v1862_v1  ;;  %1773 = vmatpush3.bf16.msra.mxu1 %v1862_v1  ;;  %v1895_v17 = vld [vmem:[%s2372_s24 + $0xd0] sm:$0xff]   ;;  %v1874_v18 = vld [vmem:[%s2372_s24 + $0x28] sm:$0xff]   ;;  %v1896_v19 = vld [vmem:[%s2372_s24 + $0xd8] sm:$0xff]   ;;  %s2037_s21 = sshll.u32 %s2117_s19, 4  ;;  %s2038_s21 = int_to_ptr.vmem [resolvable:$false] %s2037_s21 }
  0x8c   : > { %1648 = vmatprep.subr.bf16.mxu0 %v1863_v2  ;;  %1766 = vmatprep.subr.bf16.mxu1 %v1863_v2  ;;  %v1875_v20 = vld [vmem:[%s2372_s24 + $0x30] sm:$0xff]   ;;  %v1897_v21 = vld [vmem:[%s2372_s24 + $0xe0] sm:$0xff]   ;;  %v1876_v22 = vld [vmem:[%s2372_s24 + $0x38] sm:$0xff]   ;;  %p2035_p3 = pnand %p2034_p10, %p2317_p5  ;;  %s2039_s17 = scalar_lea.vmem %s2038_s21, 64 }
  0x8d   : > { %v1898_v23 = vld [vmem:[%s2372_s24 + $0xe8] sm:$0xff]   ;;  %v1877_v24 = vld [vmem:[%s2372_s24 + $0x40] sm:$0xff]   ;;  %v1899_v25 = vld [vmem:[%s2372_s24 + $0xf0] sm:$0xff]   ;;  %p2040_p12 = scmp.lt.s32.totalorder %s2587_s10, %s2038_s21  ;;  %p2041_p1 = scmp.lt.s32.totalorder %s2039_s17, %s2033_s9 }
  0x8e   : > { %v1878_v26 = vld [vmem:[%s2372_s24 + $0x48] sm:$0xff]   ;;  %v1900_v27 = vld [vmem:[%s2372_s24 + $0xf8] sm:$0xff]   ;;  %v1879_v28 = vld [vmem:[%s2372_s24 + $0x50] sm:$0xff]   ;;  %p2036_p7 = pneg %p2035_p3 }
  0x8f   : > { %1649 = vmatpush3.bf16.msra.mxu0 %v1863_v2  ;;  %1774 = vmatpush3.bf16.msra.mxu1 %v1863_v2  ;;  %v1880_v29 = vld [vmem:[%s2372_s24 + $0x58] sm:$0xff]   ;;  %v1881_v30 = vld [vmem:[%s2372_s24 + $0x60] sm:$0xff]   ;;  %v1882_v31 = vld [vmem:[%s2372_s24 + $0x68] sm:$0xff]   ;;  %p2042_p2 = por %p2041_p1, %p2040_p12 }
  0x90   : > { %1650 = vmatprep.subr.bf16.mxu0 %v1864_v3  ;;  %1767 = vmatprep.subr.bf16.mxu1 %v1864_v3  ;;  %v1883_v32 = vld [vmem:[%s2372_s24 + $0x70] sm:$0xff]   ;;  %v1884_v33 = vld [vmem:[%s2372_s24 + $0x78] sm:$0xff]   ;;  %v1885_v34 = vld [vmem:[%s2372_s24 + $0x80] sm:$0xff]  }
  0x91   : > { %v1886_v35 = vld [vmem:[%s2372_s24 + $0x88] sm:$0xff]   ;;  %v1887_v36 = vld [vmem:[%s2372_s24 + $0x90] sm:$0xff]   ;;  %v1888_v37 = vld [vmem:[%s2372_s24 + $0x98] sm:$0xff]   ;;  %p2043_p4 = pnand %p2042_p2, %p2036_p7 }
  0x92   : > { %v1889_v38 = vld [vmem:[%s2372_s24 + $0xa0] sm:$0xff]   ;;  %v1890_v39 = vld [vmem:[%s2372_s24 + $0xa8] sm:$0xff]   ;;  %v1903_v51 = vld [vmem:[#allocation7 + $0x10] sm:$0xff]  }
  0x93   : > { %1651 = vmatpush3.bf16.msra.mxu0 %v1864_v3  ;;  %1775 = vmatpush3.bf16.msra.mxu1 %v1864_v3  ;;  %v1901_v40 = vld [vmem:[#allocation7] sm:$0xff]   ;;  %v1902_v42 = vld [vmem:[#allocation7 + $0x8] sm:$0xff]   ;;  %v1904_v59 = vld [vmem:[#allocation7 + $0x18] sm:$0xff]  }
  0x94   : > { %1652 = vmatprep.subr.bf16.mxu0 %v1865_v5  ;;  %1768 = vmatprep.subr.bf16.mxu1 %v1865_v5  ;;  %v2423_v43 = vld [vmem:[%s2631_s2] ss:$0 sm:$0xff] }
  0x97   : > { %1653 = vmatpush3.bf16.msra.mxu0 %v1865_v5  ;;  %1776 = vmatpush3.bf16.msra.mxu1 %v1865_v5 }
  0x98   : > { %1654 = vmatprep.subr.bf16.mxu0 %v1866_v6  ;;  %1769 = vmatprep.subr.bf16.mxu1 %v1866_v6 }
  0x9b   : > { %1655 = vmatpush3.bf16.msra.mxu0 %v1866_v6  ;;  %1777 = vmatpush3.bf16.msra.mxu1 %v1866_v6 }
  0x9c   : > { %1656 = vmatprep.subr.bf16.mxu0 %v1867_v7  ;;  %1770 = vmatprep.subr.bf16.mxu1 %v1867_v7 }
  0x9f   : > { %1657 = vmatpush3.bf16.msra.mxu0 %v1867_v7  ;;  %1778 = vmatpush3.bf16.msra.mxu1 %v1867_v7  ;;  %v1905_v7 = vld [vmem:[#allocation7 + $0x20] sm:$0xff]  }
  0xa0   : > { %1658 = vmatprep.subr.bf16.mxu0 %v1868_v8  ;;  %1771 = vmatprep.subr.bf16.mxu1 %v1868_v8 }
  0xa3   : > { %1659 = vmatpush3.bf16.msra.mxu0 %v1868_v8  ;;  %1779 = vmatpush3.bf16.msra.mxu1 %v1868_v8 }
  0xa4   : > { %1724 = vmatprep.subr.bf16.mxu1 %v2115_v41 }
  0xa6   : > { %1661 = vmatmul.mubr.bf16.vlgmr.msra.gmra.mrb[0].mxu0 %v1870_v9  ;;  %1705 = vmatmul.mubr.bf16.vlgmr.msra.gmra.mrb[0].mxu1 %v1892_v12 }
  0xa7   : > { %1664 = vmatprep.mubr.bf16.mxu0 %v1871_v10  ;;  %1708 = vmatprep.mubr.bf16.mxu1 %v1893_v13 }
  0xa8   : > { %1725 = vmatpush3.bf16.msra.mxu1 %v1901_v40 }
  0xa9   : > { %1726 = vmatprep.subr.bf16.mxu1 %v2115_v41 }
  0xac   : > { %1727 = vmatpush3.bf16.msra.mxu1 %v1902_v42 }
  0xad   : > { %1728 = vmatprep.subr.bf16.mxu1 %v2115_v41 }
  0xae   : > { %1665 = vmatmul.mubr.bf16.gmra.mrb[4].mxu0 %v1872_v14  ;;  %1709 = vmatmul.mubr.bf16.gmra.mrb[4].mxu1 %v1894_v16 }
  0xaf   : > { %1668 = vmatprep.mubr.bf16.mxu0 %v1873_v15  ;;  %1712 = vmatprep.mubr.bf16.mxu1 %v1895_v17  ;;  %v1906_v17 = vld [vmem:[#allocation7 + $0x28] sm:$0xff]  }
  0xb0   : > { %1729 = vmatpush3.bf16.msra.mxu1 %v1903_v51 }
  0xb1   : > { %1730 = vmatprep.subr.bf16.mxu1 %v2115_v41 }
  0xb4   : > { %1731 = vmatpush3.bf16.msra.mxu1 %v1904_v59 }
  0xb5   : > { %1732 = vmatprep.subr.bf16.mxu1 %v2115_v41 }
  0xb6   : > { %1669 = vmatmul.mubr.bf16.gmra.mrb[8].mxu0 %v1874_v18  ;;  %1713 = vmatmul.mubr.bf16.gmra.mrb[8].mxu1 %v1896_v19 }
  0xb7   : > { %1672 = vmatprep.mubr.bf16.mxu0 %v1875_v20  ;;  %1716 = vmatprep.mubr.bf16.mxu1 %v1897_v21 }
  0xb8   : > { %1733 = vmatpush3.bf16.msra.mxu1 %v1905_v7 }
  0xb9   : > { %1734 = vmatprep.subr.bf16.mxu1 %v2115_v41 }
  0xbc   : > { %1735 = vmatpush3.bf16.msra.mxu1 %v1906_v17 }
  0xbd   : > { %1736 = vmatprep.subr.bf16.mxu1 %v2115_v41 }
  0xbe   : > { %1673 = vmatmul.mubr.bf16.gmra.mrb[12].mxu0 %v1876_v22  ;;  %1717 = vmatmul.mubr.bf16.gmra.mrb[12].mxu1 %v1898_v23 }
  0xbf   : > { %1676 = vmatprep.mubr.bf16.mxu0 %v1877_v24  ;;  %1720 = vmatprep.mubr.bf16.mxu1 %v1899_v25 }
  0xc6   : > { %1677 = vmatmul.mubr.bf16.gmra.mrb[16].mxu0 %v1878_v26  ;;  %1721 = vmatmul.mubr.bf16.gmra.mrb[16].mxu1 %v1900_v27 }
  0xc7   : > { %1680 = vmatprep.mubr.bf16.mxu0 %v1879_v28  ;;  %1740 = vmatprep.mubr.msk.bf16.mxu1 %vm2116_vm0, %v2115_v41 }
  0xce   : > { %1681 = vmatmul.mubr.bf16.gmra.mrb[20].mxu0 %v1880_v29  ;;  %v1907_v29 = vld [vmem:[#allocation7 + $0x30] sm:$0xff]  }
  0xcf   : > { %1684 = vmatprep.mubr.bf16.mxu0 %v1881_v30  ;;  %1737 = vmatpush3.bf16.msra.mxu1 %v1907_v29 }
  0xd0   : > { %1738 = vmatprep.subr.bf16.mxu1 %v2115_v41 }
  0xd6   : > { %1685 = vmatmul.mubr.bf16.gmra.mrb[24].mxu0 %v1882_v31 }
  0xd7   : > { %1688 = vmatprep.mubr.bf16.mxu0 %v1883_v32 }
  0xde   : > { %1689 = vmatmul.mubr.bf16.gmra.mrb[28].mxu0 %v1884_v33 }
  0xdf   : > { %1692 = vmatprep.mubr.bf16.mxu0 %v1885_v34 }
  0xe6   : > { %1693 = vmatmul.mubr.bf16.gmra.mrb[32].mxu0 %v1886_v35 }
  0xe7   : > { %1696 = vmatprep.mubr.bf16.mxu0 %v1887_v36 }
  0xee   : > { %1697 = vmatmul.mubr.bf16.gmra.mrb[36].mxu0 %v1888_v37 }
  0xef   : > { %1700 = vmatprep.mubr.bf16.mxu0 %v1889_v38 }
  0xf6   : > { %1701 = vmatmul.mubr.bf16.gmra.mrb[40].mxu0 %v1890_v39  ;;  %v1908_v39 = vld [vmem:[#allocation7 + $0x38] sm:$0xff]  }
  0xf7   : > { %1739 = vmatpush3.bf16.msra.mxu1 %v1908_v39 }
  0xf8   : > { %1744 = vmatprep.subr.bf16.mxu1 %v2115_v41 }
 0x179   : > { %v1662_v44 = vpop.f32.mrb[0].mxu0  ;;  %v2425_v45 = vpop.f32.mrb[0].mxu1 }
 0x17a   : > { %v730_v46 = vpop.f32.mrb[1].mxu0  ;;  %v2427_v47 = vpop.f32.mrb[1].mxu1  ;;  %v739_v54 = vadd.f32 %v1662_v44, %v2423_v43 }
 0x17b   : > { %v731_v48 = vadd.f32 %v2423_v43, %v730_v46  ;;  %v1663_v49 = vpop.f32.mrb[2].mxu0  ;;  %v2431_v50 = vpop.f32.mrb[2].mxu1 }
 0x17c   : > { %v733_v52 = vpop.f32.mrb[3].mxu0  ;;  %v2433_v53 = vpop.f32.mrb[3].mxu1  ;;  %v742_v57 = vadd.f32 %v1663_v49, %v2423_v43  ;;  %v987_v60 = vmax.f32 %v739_v54, 0.0 }
 0x17d   : > { %v734_v55 = vadd.f32 %v2423_v43, %v733_v52  ;;  %v985_v56 = vmax.f32 %v731_v48, 0.0 }
 0x17e   : > { %v988_v2 = vmax.f32 %v742_v57, 0.0 }
 0x17f   : > { %v986_v58 = vmax.f32 %v734_v55, 0.0 }
 0x181   : > { %v1049_v61 = vadd.f32 %v986_v58, %v985_v56  ;;  %v1666_v62 = vpop.f32.mrb[4].mxu0  ;;  %v2439_v63 = vpop.f32.mrb[4].mxu1 }
 0x182   : > { %v746_v0 = vpop.f32.mrb[5].mxu0  ;;  %v2441_v1 = vpop.f32.mrb[5].mxu1  ;;  %v755_v10 = vadd.f32 %v1666_v62, %v2423_v43 }
 0x183   : > { %v1050_v3 = vadd.f32 %v1049_v61, %v987_v60  ;;  %v747_v4 = vadd.f32 %v2423_v43, %v746_v0  ;;  %v1667_v5 = vpop.f32.mrb[6].mxu0  ;;  %v2445_v6 = vpop.f32.mrb[6].mxu1 }
 0x184   : > { %v749_v8 = vpop.f32.mrb[7].mxu0  ;;  %v2447_v9 = vpop.f32.mrb[7].mxu1  ;;  %v758_v15 = vadd.f32 %v1667_v5, %v2423_v43  ;;  %v991_v18 = vmax.f32 %v755_v10, 0.0 }
 0x185   : > { %v989_v11 = vmax.f32 %v747_v4, 0.0  ;;  %v1051_v12 = vadd.f32 %v1050_v3, %v988_v2  ;;  %v750_v13 = vadd.f32 %v2423_v43, %v749_v8 }
 0x186   : > { %v992_v24 = vmax.f32 %v758_v15, 0.0 }
 0x187   : > { %v1052_v14 = vadd.f32 %v1051_v12, %v989_v11  ;;  %v990_v16 = vmax.f32 %v750_v13, 0.0 }
 0x189   : > { %v1053_v19 = vadd.f32 %v1052_v14, %v990_v16  ;;  %v1670_v20 = vpop.f32.mrb[8].mxu0  ;;  %v2453_v21 = vpop.f32.mrb[8].mxu1 }
 0x18a   : > { %v762_v22 = vpop.f32.mrb[9].mxu0  ;;  %v2455_v23 = vpop.f32.mrb[9].mxu1  ;;  %v771_v32 = vadd.f32 %v1670_v20, %v2423_v43 }
 0x18b   : > { %v1054_v25 = vadd.f32 %v1053_v19, %v991_v18  ;;  %v763_v26 = vadd.f32 %v2423_v43, %v762_v22  ;;  %v1671_v27 = vpop.f32.mrb[10].mxu0  ;;  %v2459_v28 = vpop.f32.mrb[10].mxu1 }
 0x18c   : > { %v765_v30 = vpop.f32.mrb[11].mxu0  ;;  %v2461_v31 = vpop.f32.mrb[11].mxu1  ;;  %v774_v37 = vadd.f32 %v1671_v27, %v2423_v43  ;;  %v995_v40 = vmax.f32 %v771_v32, 0.0 }
 0x18d   : > { %v993_v33 = vmax.f32 %v763_v26, 0.0  ;;  %v1055_v34 = vadd.f32 %v1054_v25, %v992_v24  ;;  %v766_v35 = vadd.f32 %v2423_v43, %v765_v30 }
 0x18e   : > { %v996_v51 = vmax.f32 %v774_v37, 0.0 }
 0x18f   : > { %v1056_v36 = vadd.f32 %v1055_v34, %v993_v33  ;;  %v994_v38 = vmax.f32 %v766_v35, 0.0 }
 0x191   : > { %v1057_v42 = vadd.f32 %v1056_v36, %v994_v38  ;;  %v1674_v44 = vpop.f32.mrb[12].mxu0  ;;  %v2469_v46 = vpop.f32.mrb[12].mxu1 }
 0x192   : > { %v778_v48 = vpop.f32.mrb[13].mxu0  ;;  %v2471_v49 = vpop.f32.mrb[13].mxu1  ;;  %v787_v59 = vadd.f32 %v1674_v44, %v2423_v43 }
 0x193   : > { %v1058_v52 = vadd.f32 %v1057_v42, %v995_v40  ;;  %v779_v54 = vadd.f32 %v2423_v43, %v778_v48  ;;  %v1675_v55 = vpop.f32.mrb[14].mxu0  ;;  %v2475_v56 = vpop.f32.mrb[14].mxu1 }
 0x194   : > { %v781_v57 = vpop.f32.mrb[15].mxu0  ;;  %v2477_v58 = vpop.f32.mrb[15].mxu1  ;;  %v790_v2 = vadd.f32 %v1675_v55, %v2423_v43  ;;  %v999_v4 = vmax.f32 %v787_v59, 0.0 }
 0x195   : > { %v997_v60 = vmax.f32 %v779_v54, 0.0  ;;  %v1059_v61 = vadd.f32 %v1058_v52, %v996_v51  ;;  %v782_v62 = vadd.f32 %v2423_v43, %v781_v57 }
 0x196   : > { %v1000_v12 = vmax.f32 %v790_v2, 0.0 }
 0x197   : > { %v1060_v0 = vadd.f32 %v1059_v61, %v997_v60  ;;  %v998_v3 = vmax.f32 %v782_v62, 0.0 }
 0x199   : > { %v1061_v5 = vadd.f32 %v1060_v0, %v998_v3  ;;  %v1678_v7 = vpop.f32.mrb[16].mxu0  ;;  %v2482_v8 = vpop.f32.mrb[16].mxu1 }
 0x19a   : > { %v794_v10 = vpop.f32.mrb[17].mxu0  ;;  %v2484_v11 = vpop.f32.mrb[17].mxu1  ;;  %v803_v19 = vadd.f32 %v1678_v7, %v2423_v43 }
 0x19b   : > { %v1062_v13 = vadd.f32 %v1061_v5, %v999_v4  ;;  %v795_v14 = vadd.f32 %v2423_v43, %v794_v10  ;;  %v1679_v15 = vpop.f32.mrb[18].mxu0  ;;  %v2487_v16 = vpop.f32.mrb[18].mxu1 }
 0x19c   : > { %v797_v17 = vpop.f32.mrb[19].mxu0  ;;  %v2489_v18 = vpop.f32.mrb[19].mxu1  ;;  %v806_v26 = vadd.f32 %v1679_v15, %v2423_v43  ;;  %v1003_v29 = vmax.f32 %v803_v19, 0.0 }
 0x19d   : > { %v1001_v20 = vmax.f32 %v795_v14, 0.0  ;;  %v1063_v22 = vadd.f32 %v1062_v13, %v1000_v12  ;;  %v798_v24 = vadd.f32 %v2423_v43, %v797_v17 }
 0x19e   : > { %v1004_v34 = vmax.f32 %v806_v26, 0.0 }
 0x19f   : > { %v1064_v25 = vadd.f32 %v1063_v22, %v1001_v20  ;;  %v1002_v27 = vmax.f32 %v798_v24, 0.0 }
 0x1a1   : > { %v1065_v30 = vadd.f32 %v1064_v25, %v1002_v27  ;;  %v1682_v32 = vpop.f32.mrb[20].mxu0 }
 0x1a2   : > { %v810_v33 = vpop.f32.mrb[21].mxu0  ;;  %v819_v39 = vadd.f32 %v1682_v32, %v2423_v43 }
 0x1a3   : > { %v1066_v35 = vadd.f32 %v1065_v30, %v1003_v29  ;;  %v811_v36 = vadd.f32 %v2423_v43, %v810_v33  ;;  %v1683_v37 = vpop.f32.mrb[22].mxu0 }
 0x1a4   : > { %v813_v38 = vpop.f32.mrb[23].mxu0  ;;  %v822_v51 = vadd.f32 %v1683_v37, %v2423_v43  ;;  %v1007_v54 = vmax.f32 %v819_v39, 0.0 }
 0x1a5   : > { %v1005_v40 = vmax.f32 %v811_v36, 0.0  ;;  %v1067_v42 = vadd.f32 %v1066_v35, %v1004_v34  ;;  %v814_v44 = vadd.f32 %v2423_v43, %v813_v38 }
 0x1a6   : > { %v1008_v60 = vmax.f32 %v822_v51, 0.0 }
 0x1a7   : > { %v1068_v48 = vadd.f32 %v1067_v42, %v1005_v40  ;;  %v1006_v52 = vmax.f32 %v814_v44, 0.0 }
 0x1a9   : > { %v1069_v55 = vadd.f32 %v1068_v48, %v1006_v52  ;;  %v1686_v57 = vpop.f32.mrb[24].mxu0 }
 0x1aa   : > { %v826_v59 = vpop.f32.mrb[25].mxu0  ;;  %v835_v3 = vadd.f32 %v1686_v57, %v2423_v43 }
 0x1ab   : > { %v1070_v61 = vadd.f32 %v1069_v55, %v1007_v54  ;;  %v827_v62 = vadd.f32 %v2423_v43, %v826_v59  ;;  %v1687_v0 = vpop.f32.mrb[26].mxu0 }
 0x1ac   : > { %v829_v2 = vpop.f32.mrb[27].mxu0  ;;  %v838_v12 = vadd.f32 %v1687_v0, %v2423_v43  ;;  %v1011_v14 = vmax.f32 %v835_v3, 0.0 }
 0x1ad   : > { %v1009_v4 = vmax.f32 %v827_v62, 0.0  ;;  %v1071_v5 = vadd.f32 %v1070_v61, %v1008_v60  ;;  %v830_v7 = vadd.f32 %v2423_v43, %v829_v2 }
 0x1ae   : > { %v1012_v20 = vmax.f32 %v838_v12, 0.0 }
 0x1af   : > { %v1072_v10 = vadd.f32 %v1071_v5, %v1009_v4  ;;  %v1010_v13 = vmax.f32 %v830_v7, 0.0 }
 0x1b1   : > { %v1073_v15 = vadd.f32 %v1072_v10, %v1010_v13  ;;  %v1690_v17 = vpop.f32.mrb[28].mxu0 }
 0x1b2   : > { %v842_v19 = vpop.f32.mrb[29].mxu0  ;;  %v851_v27 = vadd.f32 %v1690_v17, %v2423_v43 }
 0x1b3   : > { %v1074_v22 = vadd.f32 %v1073_v15, %v1011_v14  ;;  %v843_v24 = vadd.f32 %v2423_v43, %v842_v19  ;;  %v1691_v25 = vpop.f32.mrb[30].mxu0 }
 0x1b4   : > { %v845_v26 = vpop.f32.mrb[31].mxu0  ;;  %v854_v34 = vadd.f32 %v1691_v25, %v2423_v43  ;;  %v1015_v36 = vmax.f32 %v851_v27, 0.0 }
 0x1b5   : > { %v1013_v29 = vmax.f32 %v843_v24, 0.0  ;;  %v1075_v30 = vadd.f32 %v1074_v22, %v1012_v20  ;;  %v846_v32 = vadd.f32 %v2423_v43, %v845_v26 }
 0x1b6   : > { %v1016_v40 = vmax.f32 %v854_v34, 0.0 }
 0x1b7   : > { %v1076_v33 = vadd.f32 %v1075_v30, %v1013_v29  ;;  %v1014_v35 = vmax.f32 %v846_v32, 0.0 }
 0x1b9   : > { %v1077_v37 = vadd.f32 %v1076_v33, %v1014_v35  ;;  %v1694_v38 = vpop.f32.mrb[32].mxu0 }
 0x1ba   : > { %v858_v39 = vpop.f32.mrb[33].mxu0  ;;  %v867_v54 = vadd.f32 %v1694_v38, %v2423_v43 }
 0x1bb   : > { %v1078_v42 = vadd.f32 %v1077_v37, %v1015_v36  ;;  %v859_v44 = vadd.f32 %v2423_v43, %v858_v39  ;;  %v1695_v48 = vpop.f32.mrb[34].mxu0 }
 0x1bc   : > { %v861_v51 = vpop.f32.mrb[35].mxu0  ;;  %v870_v59 = vadd.f32 %v1695_v48, %v2423_v43  ;;  %v1019_v61 = vmax.f32 %v867_v54, 0.0 }
 0x1bd   : > { %v2507_v52 = vadd.f32 %v1078_v42, %v1016_v40  ;;  %v862_v55 = vadd.f32 %v2423_v43, %v861_v51  ;;  %v1017_v57 = vmax.f32 %v859_v44, 0.0  ;;  %v907_v42 = vadd.f32 %v2423_v43, %v2427_v47 }
 0x1be   : > { %v1020_v3 = vmax.f32 %v870_v59, 0.0  ;;  %v915_v59 = vadd.f32 %v2425_v45, %v2423_v43  ;;  %v923_v47 = vadd.f32 %v2423_v43, %v2441_v1  ;;  %v931_v45 = vadd.f32 %v2439_v63, %v2423_v43 }
 0x1bf   : > { %v1018_v60 = vmax.f32 %v862_v55, 0.0  ;;  %v1029_v55 = vmax.f32 %v907_v42, 0.0  ;;  %v939_v1 = vadd.f32 %v2423_v43, %v2455_v23  ;;  %v947_v63 = vadd.f32 %v2453_v21, %v2423_v43 }
 0x1c0   : > { %v955_v23 = vadd.f32 %v2423_v43, %v2471_v49  ;;  %v963_v21 = vadd.f32 %v2469_v46, %v2423_v43  ;;  %v971_v49 = vadd.f32 %v2423_v43, %v2484_v11  ;;  %v974_v46 = vadd.f32 %v2423_v43, %v2489_v18 }
 0x1c1   : > { %v1086_v62 = vadd.f32 %v1018_v60, %v1017_v57  ;;  %v1698_v0 = vpop.f32.mrb[36].mxu0  ;;  %v910_v57 = vadd.f32 %v2423_v43, %v2433_v53  ;;  %v926_v53 = vadd.f32 %v2423_v43, %v2447_v9  ;;  %v942_v9 = vadd.f32 %v2423_v43, %v2461_v31 }
 0x1c2   : > { %v874_v2 = vpop.f32.mrb[37].mxu0  ;;  %v883_v12 = vadd.f32 %v1698_v0, %v2423_v43  ;;  %v958_v31 = vadd.f32 %v2423_v43, %v2477_v58  ;;  %v1045_v42 = vmax.f32 %v971_v49, 0.0  ;;  %v1046_v11 = vmax.f32 %v974_v46, 0.0 }
 0x1c3   : > { %v1087_v4 = vadd.f32 %v1086_v62, %v1019_v61  ;;  %v875_v5 = vadd.f32 %v2423_v43, %v874_v2  ;;  %v1699_v7 = vpop.f32.mrb[38].mxu0  ;;  %v918_v62 = vadd.f32 %v2431_v50, %v2423_v43  ;;  %v1030_v0 = vmax.f32 %v910_v57, 0.0 }
 0x1c4   : > { %v877_v10 = vpop.f32.mrb[39].mxu0  ;;  %v886_v19 = vadd.f32 %v1699_v7, %v2423_v43  ;;  %v1023_v22 = vmax.f32 %v883_v12, 0.0  ;;  %v1031_v2 = vmax.f32 %v915_v59, 0.0  ;;  %v1033_v7 = vmax.f32 %v923_v47, 0.0 }
 0x1c5   : > { %v1021_v13 = vmax.f32 %v875_v5, 0.0  ;;  %v1088_v14 = vadd.f32 %v1087_v4, %v1020_v3  ;;  %v878_v15 = vadd.f32 %v2423_v43, %v877_v10  ;;  %v1032_v4 = vmax.f32 %v918_v62, 0.0 }
 0x1c6   : > { %v1024_v27 = vmax.f32 %v886_v19, 0.0  ;;  %v934_v50 = vadd.f32 %v2445_v6, %v2423_v43  ;;  %v950_v6 = vadd.f32 %v2459_v28, %v2423_v43  ;;  %v1080_v28 = vrot.slane %v2507_v52, 4 }
 0x1c7   : > { %v1089_v17 = vadd.f32 %v1088_v14, %v1021_v13  ;;  %v1022_v20 = vmax.f32 %v878_v15, 0.0  ;;  %v1034_v13 = vmax.f32 %v926_v53, 0.0  ;;  %v1035_v14 = vmax.f32 %v931_v45, 0.0 }
 0x1c9   : > { %v1090_v24 = vadd.f32 %v1089_v17, %v1022_v20  ;;  %v1702_v25 = vpop.f32.mrb[40].mxu0  ;;  %v1036_v17 = vmax.f32 %v934_v50, 0.0  ;;  %v1037_v20 = vmax.f32 %v939_v1, 0.0  ;;  %v1909_v50 = vld [vmem:[#allocation8] sm:$0xff]   ;;  %v1911_v1 = vld [vmem:[#allocation8 + $0x10] sm:$0xff]  }
 0x1ca   : > { %v890_v26 = vpop.f32.mrb[41].mxu0  ;;  %v899_v34 = vadd.f32 %v1702_v25, %v2423_v43  ;;  %v1038_v25 = vmax.f32 %v942_v9, 0.0 }
 0x1cb   : > { %v1091_v29 = vadd.f32 %v1090_v24, %v1023_v22  ;;  %v891_v30 = vadd.f32 %v2423_v43, %v890_v26  ;;  %v1703_v32 = vpop.f32.mrb[42].mxu0  ;;  %v1039_v26 = vmax.f32 %v947_v63, 0.0 }
 0x1cc   : > { %v893_v33 = vpop.f32.mrb[43].mxu0  ;;  %v902_v39 = vadd.f32 %v1703_v32, %v2423_v43  ;;  %v1027_v44 = vmax.f32 %v899_v34, 0.0  ;;  %v1041_v32 = vmax.f32 %v955_v23, 0.0  ;;  %v966_v34 = vadd.f32 %v2475_v56, %v2423_v43 }
 0x1cd   : > { %v1025_v35 = vmax.f32 %v891_v30, 0.0  ;;  %v1092_v36 = vadd.f32 %v1091_v29, %v1024_v27  ;;  %v894_v37 = vadd.f32 %v2423_v43, %v893_v33  ;;  %v1040_v29 = vmax.f32 %v950_v6, 0.0 }
 0x1ce   : > { %v1028_v51 = vmax.f32 %v902_v39, 0.0  ;;  %v1044_v39 = vmax.f32 %v966_v34, 0.0  ;;  %v979_v56 = vadd.f32 %v2482_v8, %v2423_v43 }
 0x1cf   : > { %v1093_v38 = vadd.f32 %v1092_v36, %v1025_v35  ;;  %v1026_v40 = vmax.f32 %v894_v37, 0.0  ;;  %v1042_v36 = vmax.f32 %v958_v31, 0.0  ;;  %v1043_v37 = vmax.f32 %v963_v21, 0.0 }
 0x1d1   : > { %v1094_v48 = vadd.f32 %v1093_v38, %v1026_v40  ;;  %v1081_v40 = vadd.f32 %v1080_v28, %v2507_v52 }
 0x1d3   : > { %v1095_v54 = vadd.f32 %v1094_v48, %v1027_v44  ;;  %v1082_v48 = vrot.slane %v1081_v40, 2 }
 0x1d5   : > { %v1096_v60 = vadd.f32 %v1095_v54, %v1028_v51  ;;  %v982_v54 = vadd.f32 %v2487_v16, %v2423_v43  ;;  %v1083_v59 = vadd.f32 %v1082_v48, %v1081_v40  ;;  %v1570_v40 = vld [vmem:[%s2633_s4] ss:$0 sm:$0xff] }
 0x1d7   : > { %v1097_v61 = vadd.f32 %v1096_v60, %v1029_v55  ;;  %v1047_v55 = vmax.f32 %v979_v56, 0.0  ;;  %v1048_v60 = vmax.f32 %v982_v54, 0.0  ;;  %v1084_v62 = vrot.slane %v1083_v59, 1 }
 0x1d9   : > { %v1098_v3 = vadd.f32 %v1097_v61, %v1030_v0  ;;  %v1085_v18 = vadd.f32 %v1084_v62, %v1083_v59 }
 0x1db   : > { %v1099_v5 = vadd.f32 %v1098_v3, %v1031_v2  ;;  %v1124_v8 = vmul.f32 0.00390625, %v1085_v18 }
 0x1dd   : > { %v1100_v10 = vadd.f32 %v1099_v5, %v1032_v4 }
 0x1df   : > { %v1101_v12 = vadd.f32 %v1100_v10, %v1033_v7  ;;  %v1126_v7 = vpack.c.bf16 %v1124_v8, %v1124_v8 }
 0x1e1   : > { %v1102_v15 = vadd.f32 %v1101_v12, %v1034_v13  ;;  %v1146_v43 = vunpack.c.l.b16 %v1126_v7  ;;  %v1910_v13 = vld [vmem:[#allocation8 + $0x8] sm:$0xff]  }
 0x1e3   : > { %v1103_v19 = vadd.f32 %v1102_v15, %v1035_v14  ;;  %v1912_v14 = vld [vmem:[#allocation8 + $0x18] sm:$0xff]   ;;  %v1913_v15 = vld [vmem:[#allocation8 + $0x20] sm:$0xff]  }
 0x1e5   : > { %v1104_v22 = vadd.f32 %v1103_v19, %v1036_v17  ;;  %v1914_v17 = vld [vmem:[#allocation8 + $0x28] sm:$0xff]   ;;  %v1915_v19 = vld [vmem:[#allocation8 + $0x30] sm:$0xff]  }
 0x1e7   : > { %v1105_v24 = vadd.f32 %v1104_v22, %v1037_v20  ;;  %v1916_v20 = vld [vmem:[#allocation8 + $0x38] sm:$0xff]  }
 0x1e9   : > { %v1106_v27 = vadd.f32 %v1105_v24, %v1038_v25 }
 0x1eb   : > { %v1107_v30 = vadd.f32 %v1106_v27, %v1039_v26 }
 0x1ed   : > { %v1108_v33 = vadd.f32 %v1107_v30, %v1040_v29 }
 0x1ef   : > { %v1109_v35 = vadd.f32 %v1108_v33, %v1041_v32 }
 0x1f1   : > { %v1110_v38 = vadd.f32 %v1109_v35, %v1042_v36 }
 0x1f3   : > { %v1111_v58 = vadd.f32 %v1110_v38, %v1043_v37 }
 0x1f5   : > { %v1112_v44 = vadd.f32 %v1111_v58, %v1044_v39 }
 0x1f7   : > { %v1113_v51 = vadd.f32 %v1112_v44, %v1045_v42  ;;  %v1571_v42 = vld [vmem:[%s2634_s5] ss:$0 sm:$0xff] }
 0x1f9   : > { %v1114_v57 = vadd.f32 %v1113_v51, %v1046_v11  ;;  %v1572_v51 = vld [vmem:[%s2636_s7] ss:$0 sm:$0xff] }
 0x1fb   : > { %v1115_v52 = vadd.f32 %v1114_v57, %v1047_v55 }
 0x1fd   : > { %v1116_v61 = vadd.f32 %v1115_v52, %v1048_v60 }
 0x1ff   : > { %v1117_v0 = vrot.slane %v1116_v61, 4 }
 0x201   : > { %v1118_v47 = vadd.f32 %v1117_v0, %v1116_v61 }
 0x203   : > { %v1119_v2 = vrot.slane %v1118_v47, 2 }
 0x205   : > { %v1120_v3 = vadd.f32 %v1119_v2, %v1118_v47 }
 0x207   : > { %v1121_v4 = vrot.slane %v1120_v3, 1 }
 0x209   : > { %v1122_v5 = vadd.f32 %v1121_v4, %v1120_v3 }
 0x20b   : > { %v1125_v53 = vmul.f32 0.00390625, %v1122_v5 }
 0x20d   : > { %v1127_v45 = vpack.c.bf16 %v1125_v53, %v1125_v53 }
 0x20f   : > { %v1147_v16 = vunpack.c.l.b16 %v1127_v45 }
 0x211   : > { %v1149_v10 = vsel %vm1148_vm1, %v1147_v16, %v1146_v43 }
 0x212   : > { %v1150_v12 = vpack.c.b16 %v1149_v10, %v1149_v10 }
 0x214   : > { %1741 = vmatmul.mubr.bf16.vlgmr.msra.gmra.mrb[20].mxu1 %v1150_v12 }
 0x215   : > { %1760 = vmatprep.mubr.msk.bf16.mxu1 %vm2116_vm0, %v2115_v41  ;;  %1745 = vmatpush3.bf16.msra.mxu1 %v1909_v50 }
 0x216   : > { %1746 = vmatprep.subr.bf16.mxu1 %v2115_v41 }
 0x219   : > { %1747 = vmatpush3.bf16.msra.mxu1 %v1910_v13 }
 0x21a   : > { %1748 = vmatprep.subr.bf16.mxu1 %v2115_v41 }
 0x21d   : > { %1749 = vmatpush3.bf16.msra.mxu1 %v1911_v1 }
 0x21e   : > { %1750 = vmatprep.subr.bf16.mxu1 %v2115_v41 }
 0x221   : > { %1751 = vmatpush3.bf16.msra.mxu1 %v1912_v14 }
 0x222   : > { %1752 = vmatprep.subr.bf16.mxu1 %v2115_v41 }
 0x225   : > { %1753 = vmatpush3.bf16.msra.mxu1 %v1913_v15 }
 0x226   : > { %1754 = vmatprep.subr.bf16.mxu1 %v2115_v41 }
 0x229   : > { %1755 = vmatpush3.bf16.msra.mxu1 %v1914_v17 }
 0x22a   : > { %1756 = vmatprep.subr.bf16.mxu1 %v2115_v41 }
 0x22d   : > { %1757 = vmatpush3.bf16.msra.mxu1 %v1915_v19 }
 0x22e   : > { %1758 = vmatprep.subr.bf16.mxu1 %v2115_v41 }
 0x231   : > { %1759 = vmatpush3.bf16.msra.mxu1 %v1916_v20 }
 0x2e7   : > { %v1234_v9 = vpop.f32.mrb[20].mxu1 }
 0x2e8   : > { %v1241_v63 = vsel %vm1240_vm2, %v1234_v9, 0.0  ;;  %v1742_v22 = vpop.f32.mrb[21].mxu1 }
 0x2e9   : > { %v1242_v24 = vrot.slane %v1241_v63, 4  ;;  %v1237_v6 = vpop.f32.mrb[22].mxu1 }
 0x2ea   : > { %v1743_v25 = vpop.f32.mrb[23].mxu1 }
 0x2eb   : > { %v1243_v23 = vadd.f32 %v1242_v24, %v1241_v63 }
 0x2ed   : > { %v1244_v26 = vrot.slane %v1243_v23, 2 }
 0x2ef   : > { %v1245_v27 = vadd.f32 %v1244_v26, %v1243_v23 }
 0x2f1   : > { %v1246_v29 = vrot.slane %v1245_v27, 1 }
 0x2f3   : > { %v1247_v30 = vadd.f32 %v1246_v29, %v1245_v27 }
 0x2f5   : > { %v1249_v32 = vmul.f32 0.5, %v1247_v30 }
 0x2f7   : > { %v1250_v31 = vsub.f32 %v1234_v9, %v1249_v32 }
 0x2f9   : > { %v1251_v21 = vmul.f32 %v1250_v31, %v1250_v31 }
 0x2fb   : > { %v1252_v33 = vsel %vm1240_vm2, %v1251_v21, 0.0 }
 0x2fc   : > { %v1253_v34 = vrot.slane %v1252_v33, 4 }
 0x2fe   : > { %v1254_v41 = vadd.f32 %v1253_v34, %v1252_v33 }
 0x300   : > { %v1255_v28 = vrot.slane %v1254_v41, 2 }
 0x302   : > { %v1256_v35 = vadd.f32 %v1255_v28, %v1254_v41 }
 0x304   : > { %v1257_v36 = vrot.slane %v1256_v35, 1 }
 0x306   : > { %v1258_v49 = vadd.f32 %v1257_v36, %v1256_v35 }
 0x308   : > { %v1259_v37 = vmul.f32 0.5, %v1258_v49 }
 0x30a   : > { %v1260_v38 = vadd.f32 1e-05, %v1259_v37 }
 0x30c   : > { %1917 = vrsqrt.f32 %v1260_v38 }
 0x316   : > { %v1918_v39 = vpop.eup %1917 }
 0x317   : > { %v1262_v58 = vmul.f32 %v1918_v39, %v1250_v31 }
 0x319   : > { %v1270_v46 = vmul.f32 %v1570_v40, %v1262_v58 }
 0x31b   : > { %v1278_v56 = vadd.f32 %v1571_v42, %v1270_v46 }
 0x31d   : > { %v1279_v44 = vmax.f32 %v1278_v56, 0.0 }
 0x31f   : > { %v1280_v48 = vpack.c.bf16 %v1279_v44, %v1279_v44 }
 0x321   : > { %1761 = vmatmul.mubr.bf16.vlgmr.msra.gmra.mrb[24].mxu1 %v1280_v48 }
 0x3f4   : > { %v1386_v54 = vpop.f32.mrb[24].mxu1 }
 0x3f5   : > { %v1387_v11 = vadd.f32 %v1572_v51, %v1386_v54  ;;  %v1762_v55 = vpop.f32.mrb[25].mxu1 }
 0x3f6   : > { %v1389_v57 = vpop.f32.mrb[26].mxu1 }
 0x3f7   : > { %1392 = vst [vmem:[%s367_s14] sm:$0x3] %v1387_v11  ;;  %v1763_v59 = vpop.f32.mrb[27].mxu1 }
 0x3f8   : > { %2046 = shalt.err (!%p2043_p4)
}
 0x3f9   : > { %s2047_s12 = scalar_lea.hbm %s2585_s11, 32  ;;  %s2051_s16 = scalar_lea.hbm %s2637_s8, 64 }
 0x3fa   : > { %p2048_p9 = scmp.ne.s32.totalorder %s2585_s11, %s2047_s12  ;;  %p2052_p8 = scmp.lt.u32.totalorder %s2585_s11, %s2637_s8 }
 0x3fb   : > { %p2053_p13 = scmp.lt.u32.totalorder %s2051_s16, %s2047_s12  ;;  %p2055_p10 = scmp.lt.u32.totalorder %s2047_s12, %s2585_s11 }
 0x3fc   : > { %p2049_p0 = pnand %p2048_p9, %p2317_p5 }
 0x3fd   : > { %p2054_p6 = por %p2053_p13, %p2052_p8 }
 0x3fe   : > { %p2050_p11 = pneg %p2049_p0 }
 0x3ff   : > { %p2056_p3 = por %p2055_p10, %p2054_p6 }
 0x401   : > { %p2057_p7 = pnand %p2056_p3, %p2050_p11 }
 0x403   : > { %2060 = shalt.err (!%p2057_p7)
}
 0x404   : > { %1794 = dma.vmem_to_hbm [thread:$0]  (%p2317_p5), %s2587_s10, 32, %s2585_s11, %s1394_s13  }
 0x405 PF: > { %s2659_s14 = sld [smem:[#allocation15_spill]]  ;;  %s2660_s15 = sld [smem:[#allocation16_spill]] }
 0x406   : > { %p2662_p1 = scmp.ge.s32.totalorder %s2107_s30, 2 }
 0x40b   : > { %s1419_s24 = sand.u32 1, %s2659_s14   ;;  %p2661_p12 = scmp.ne.s32.totalorder %s2660_s15, 0 }
 0x40c   : > { %s1420_s9 = scalar_lea.sflag [#allocation4], %s1419_s24 }
 0x40d   : > { %p1811_p2 = pnand %p2662_p1, %p2661_p12 }
 0x40f   : > { %2090 = dma.done.wait (!%p1811_p2), %s1420_s9, 32  }
 0x410   : > { %2092 = vsyncadd (!%p1811_p2), %s1420_s9, 4294967264  ;;  %p23_p4 = scmp.ge.s32.totalorder %s2303_s26, 4   ;;  %s2663_s27 = smov %s2099_s28 }
 0x411   : > { %s2664_s28 = smov %s2103_s29  ;;  %s2665_s29 = smov %s2313_s22 }
 0x412   : > { %s2666_s30 = smov %s2303_s26  ;;  %25 = sbr.rel (!%p23_p4) target bundleno = 7 (0x7), region = 109 }
 0x419   :  { %1425 = vsyncpa [#allocation3], 1 }
 0x41a   :  { %1427 = vsyncpa [#allocation3 + $0x1], 1 }
 0x41b   :  { %1428 = vsyncpa [#allocation6], 1 }
 0x41c   :  { %1429 = vsyncpa [#allocation9], 1 }
 0x41d   :  { %1430 = vsyncpa [#allocation4], 1 }
 0x41e   :  { %1432 = vsyncpa [#allocation4 + $0x1], 1 }

</bundles_post_ra>
